<compile_context>
chip_gen: v7x
topology: tpu7x:2x2x1
jax: 0.10.0
libtpu: 0.0.40
codegen_flags: <defaults>
</compile_context>

<pallas_src>
import jax
import jax.numpy as jnp
from jax import lax
from jax.experimental import pallas as pl
from jax.experimental.pallas import tpu as pltpu

# Lane-dense tile: one (8, 128) f32 vreg-shaped block = 1024 uniforms per step.
_BLOCK_ROWS = 8
_BLOCK_LANES = 128
_BLOCK = _BLOCK_ROWS * _BLOCK_LANES  # 1024

# Hash constants (uint32 values expressed as int32 two's complement; int32
# arithmetic in XLA wraps, so the low-32-bit results match uint32 math).
_GOLDEN = -1640531527   # 0x9E3779B9
_C1 = 2146055469        # 0x7FEB352D
_C2 = -2073254261       # 0x846CA68B
_INV_2_24 = 1.0 / float(1 << 24)


def _uniform_block_kernel(seed_ref, out_ref):
    """Write one lane-dense (8, 128) tile of uniform [0, 1) float32."""
    rows, lanes = out_ref.shape  # (8, 128)

    # Global element index of each slot in this tile (counter-based PRNG).
    row = lax.broadcasted_iota(jnp.int32, (rows, lanes), 0)
    lane = lax.broadcasted_iota(jnp.int32, (rows, lanes), 1)
    base = pl.program_id(0) * (rows * lanes)
    idx = base + row * lanes + lane

    # Mix the seed into the counter, then apply a lowbias32-style integer hash.
    # int32 multiplies wrap like uint32 low bits; shifts are logical.
    x = idx ^ (seed_ref[0] * jnp.int32(_GOLDEN))
    x = x ^ lax.shift_right_logical(x, 16)
    x = x * jnp.int32(_C1)
    x = x ^ lax.shift_right_logical(x, 15)
    x = x * jnp.int32(_C2)
    x = x ^ lax.shift_right_logical(x, 16)

    # Low 24 bits -> uniform [0, 1) float32.
    bits24 = jnp.bitwise_and(x, 0x00FFFFFF)
    out_ref[...] = bits24.astype(jnp.float32) * _INV_2_24


def random_baseline2_forward(x, seed=0):
    """Pallas equivalent of RandomBaseline2.forward(x) -> (B, 1) uniform [0,1)."""
    b = x.shape[0]
    num_blocks = max(1, pl.cdiv(b, _BLOCK))
    out_rows = num_blocks * _BLOCK_ROWS
    seed_arr = jnp.array([seed], dtype=jnp.int32)

    lane_dense = pl.pallas_call(
        _uniform_block_kernel,
        out_shape=jax.ShapeDtypeStruct((out_rows, _BLOCK_LANES), jnp.float32),
        grid=(num_blocks,),
        in_specs=[pl.BlockSpec(memory_space=pltpu.MemorySpace.SMEM)],
        out_specs=pl.BlockSpec((_BLOCK_ROWS, _BLOCK_LANES), lambda i: (i, 0)),
        compiler_params=pltpu.CompilerParams(
            dimension_semantics=("parallel",)),
        cost_estimate=pl.CostEstimate(
            flops=0,
            transcendentals=0,
            bytes_accessed=out_rows * _BLOCK_LANES * 4),
    )(seed_arr)

    # Lane-dense slab -> (B, 1), matching torch.rand((B, 1)).
    return lane_dense.reshape(-1)[:b].reshape(b, 1)


def init_submodel2_params(key, num_players=10):
    """Mirror SubModel2.__init__ parameter shapes (unused by this forward)."""
    per_player_features = 15
    num_teams = 2
    in_dim = num_players * per_player_features * num_teams + 1  # 301
    dims = [(in_dim, 2048), (2048, 1024), (1024, 256), (256, 1)]
    params = {}
    for name, (din, dout) in zip(["proj1", "proj2", "proj3", "head"], dims):
        key, kw, kb = jax.random.split(key, 3)
        bound = 1.0 / jnp.sqrt(din)
        params[name] = {
            "w": jax.random.uniform(kw, (dout, din), jnp.float32, -bound, bound),
            "b": jax.random.uniform(kb, (dout,), jnp.float32, -bound, bound),
        }
    return params


if __name__ == "__main__":
    key = jax.random.PRNGKey(0)
    kx, kp = jax.random.split(key)

    # x: (batch, num_players * per_player_features * num_teams + 1) = (2, 301)
    x = jax.random.normal(kx, (2, 301), dtype=jnp.float32)

    # Parameters exist in the module but are unused by RandomBaseline2.forward.
    _params = init_submodel2_params(kp)

    out = jax.block_until_ready(random_baseline2_forward(x, seed=0))
    assert out.shape == (x.shape[0], 1), out.shape
    assert out.dtype == jnp.float32, out.dtype
    assert bool(jnp.all(out >= 0.0)) and bool(jnp.all(out < 1.0)), out

    # Exercise the batch grid (B > one tile) and a different seed.
    xb = jax.random.normal(kx, (2500, 301), dtype=jnp.float32)
    outb = jax.block_until_ready(random_baseline2_forward(xb, seed=7))
    assert outb.shape == (2500, 1), outb.shape
    assert bool(jnp.all(outb >= 0.0)) and bool(jnp.all(outb < 1.0))
    # Distinct tiles should not repeat the same values.
    assert float(jnp.std(outb)) > 0.1

    print("KERNEL_OK")
</pallas_src>

<mosaic_0001>
module attributes {stable_mosaic.version = 11 : i64} {
  func.func @_uniform_block_kernel(%arg0: i32, %arg1: memref<1xi32, #tpu.memory_space<smem>>, %arg2: memref<8x128xf32, #tpu.memory_space<vmem>>) attributes {dimension_semantics = [#tpu.dimension_semantics<parallel>], iteration_bounds = array<i64: 1>, scalar_prefetch = 0 : i64, scratch_operands = 0 : i64, tpu.core_type = #tpu.core_type<tc>, window_params = [{transform_indices = @transform_0, window_bounds = array<i64: 1>}, {transform_indices = @transform_1, window_bounds = array<i64: 8, 128>}]} {
    %0 = tpu.iota {dimensions = array<i32: 0>} : vector<8x128xi32>
    %1 = tpu.iota {dimensions = array<i32: 1>} : vector<8x128xi32>
    %c1024_i32 = arith.constant 1024 : i32
    %2 = arith.muli %arg0, %c1024_i32 : i32
    %c128_i32 = arith.constant 128 : i32
    %3 = vector.broadcast %c128_i32 : i32 to vector<8x128xi32>
    %4 = arith.muli %0, %3 : vector<8x128xi32>
    %5 = vector.broadcast %2 : i32 to vector<8x128xi32>
    %6 = arith.addi %5, %4 : vector<8x128xi32>
    %7 = arith.addi %6, %1 : vector<8x128xi32>
    %c0 = arith.constant 0 : index
    %8 = memref.load %arg1[%c0] : memref<1xi32, #tpu.memory_space<smem>>
    %c-1640531527_i32 = arith.constant -1640531527 : i32
    %9 = arith.muli %8, %c-1640531527_i32 : i32
    %10 = vector.broadcast %9 : i32 to vector<8x128xi32>
    %11 = arith.xori %7, %10 : vector<8x128xi32>
    %c16_i32 = arith.constant 16 : i32
    %12 = vector.broadcast %c16_i32 : i32 to vector<8x128xi32>
    %13 = arith.shrui %11, %12 : vector<8x128xi32>
    %14 = arith.xori %11, %13 : vector<8x128xi32>
    %c2146055469_i32 = arith.constant 2146055469 : i32
    %15 = vector.broadcast %c2146055469_i32 : i32 to vector<8x128xi32>
    %16 = arith.muli %14, %15 : vector<8x128xi32>
    %c15_i32 = arith.constant 15 : i32
    %17 = vector.broadcast %c15_i32 : i32 to vector<8x128xi32>
    %18 = arith.shrui %16, %17 : vector<8x128xi32>
    %19 = arith.xori %16, %18 : vector<8x128xi32>
    %c-2073254261_i32 = arith.constant -2073254261 : i32
    %20 = vector.broadcast %c-2073254261_i32 : i32 to vector<8x128xi32>
    %21 = arith.muli %19, %20 : vector<8x128xi32>
    %c16_i32_0 = arith.constant 16 : i32
    %22 = vector.broadcast %c16_i32_0 : i32 to vector<8x128xi32>
    %23 = arith.shrui %21, %22 : vector<8x128xi32>
    %24 = arith.xori %21, %23 : vector<8x128xi32>
    %c16777215_i32 = arith.constant 16777215 : i32
    %25 = vector.broadcast %c16777215_i32 : i32 to vector<8x128xi32>
    %26 = arith.andi %24, %25 : vector<8x128xi32>
    %27 = arith.sitofp %26 : vector<8x128xi32> to vector<8x128xf32>
    %cst = arith.constant 5.96046448E-8 : f32
    %28 = vector.broadcast %cst : f32 to vector<8x128xf32>
    %29 = arith.mulf %27, %28 : vector<8x128xf32>
    %c0_1 = arith.constant 0 : index
    %c0_2 = arith.constant 0 : index
    %30 = vector.load %arg2[%c0_1, %c0_2] : memref<8x128xf32, #tpu.memory_space<vmem>>, vector<8x128xf32>
    tpu.vector_store %arg2[%c0_1, %c0_2], %29 {strides = array<i32>} : memref<8x128xf32, #tpu.memory_space<vmem>>, vector<8x128xf32>,
    return
  }
  func.func @transform_0(%arg0: i32) -> i32 {
    %c0_i32 = arith.constant 0 : i32
    %c0_i32_0 = arith.constant 0 : i32
    return %c0_i32 : i32
  }
  func.func @transform_1(%arg0: i32) -> (i32, i32) {
    %c0_i32 = arith.constant 0 : i32
    %c0_i32_0 = arith.constant 0 : i32
    return %arg0, %c0_i32 : i32, i32
  }
}

</mosaic_0001>

<bundles_post_ra>
// kernel: tpu_custom_call.1
= control target key start
LH: loop header
LB: loop body
LE: loop exit
PB: predicated region body
PF: predicated region fallthrough
CT: control target
= control target key end

     0   :  { %v10_v0 = vlaneseq  ;;  %s100_s0 = inlined_call_operand.<no memory space> [shape: s32[1], index: 0, kind: input, shape index: {}]   ;;  %s101_s1 = inlined_call_operand.hbm [shape: f32[8,128], index: 1, kind: output, shape index: {}]  }
   0x1   :  { %7 = vsyncpa [#allocation4], 0  ;;  %s20_s8 = smul.u32 2654435769, %s100_s0  ;;  %s74_s9 = smov [#allocation3]  }
   0x2   :  { %v11_v1 = vshrl.u32 %v10_v0, 7  ;;  %v13_v2 = vand.u32 127, %v10_v0  ;;  %s41_s10 = sshll.u32 %s74_s9, 4  ;;  %s42_s10 = int_to_ptr.vmem [resolvable:$true] %s41_s10 }
   0x3   :  { %v21_v4 = vstv %s20_s8  ;;  %s50_s0 = scalar_lea.vmem %s42_s10, 128  ;;  %p55_p1 = scmp.lt.s32.totalorder %s42_s10, %s42_s10 }
   0x4   :  { %v15_v3 = vmul.u32 128, %v11_v1  ;;  %p51_p0 = scmp.ne.s32.totalorder %s42_s10, %s50_s0  ;;  %p56_p2 = scmp.lt.s32.totalorder %s50_s0, %s50_s0 }
   0x6   :  { %v18_v5 = vadd.s32 %v15_v3, %v13_v2  ;;  %p57_p3 = por %p56_p2, %p55_p1 }
   0x8   :  { %v22_v6 = vxor.u32 %v21_v4, %v18_v5  ;;  %p58_p4 = pnand %p57_p3, %p51_p0 }
   0xa   :  { %v23_v7 = vshrl.u32 %v22_v6, 16 }
   0xc   :  { %v24_v8 = vxor.u32 %v23_v7, %v22_v6 }
   0xe   :  { %v25_v9 = vmul.u32 2146055469, %v24_v8 }
  0x10   :  { %v26_v10 = vshrl.u32 %v25_v9, 15 }
  0x12   :  { %v27_v11 = vxor.u32 %v26_v10, %v25_v9 }
  0x14   :  { %v28_v12 = vmul.u32 2221713035, %v27_v11 }
  0x16   :  { %v29_v13 = vshrl.u32 %v28_v12, 16 }
  0x18   :  { %v30_v14 = vxor.u32 %v29_v13, %v28_v12 }
  0x1a   :  { %v31_v15 = vand.u32 16777215, %v30_v14 }
  0x1c   :  { %v32_v16 = vcvt.s32.f32 %v31_v15 }
  0x1e   :  { %v33_v17 = vmul.f32 5.9604645e-08, %v32_v16 }
  0x20   :  { %34 = vst [vmem:[#allocation3] sm:$0xff] %v33_v17 }
  0x21   :  { %61 = shalt.err (!%p58_p4)
}
  0x22   :  { %s62_s13 = scalar_lea.hbm %s101_s1, 128 }
  0x23   :  { %p63_p5 = scmp.ne.s32.totalorder %s101_s1, %s62_s13  ;;  %p66_p6 = scmp.lt.u32.totalorder %s62_s13, %s101_s1 }
  0x25   :  { %p68_p7 = pnand %p66_p6, %p63_p5 }
  0x27   :  { %71 = shalt.err (!%p68_p7)
}
  0x28   :  { %44 = dma.vmem_to_hbm [thread:$0]  %s42_s10, 128, %s101_s1, [#allocation4]  }
  0x29   :  { %72 = dma.done.wait [#allocation4], 128  }
  0x2a   :  { %73 = vsyncadd [#allocation4], 4294967168 }
  0x2b   :  { %48 = vsyncpa [#allocation4], 1 }

</bundles_post_ra>
